<compile_context>
chip_gen: v7x
topology: tpu7x:2x2x1
jax: 0.10.0
libtpu: 0.0.40
codegen_flags: <defaults>
</compile_context>

<pallas_src>
import functools

import jax
import jax.numpy as jnp
from jax import lax
from jax.experimental import pallas as pl
from jax.experimental.pallas import tpu as pltpu

# TODO(synk): `p` (dropout prob) is undefined in the source module's __init__;
# treated as 0.0 (eval-style deterministic dropout / identity).
DROPOUT_P = 0.0


def _flash_sdpa_kernel(q_ref, k_ref, v_ref, o_ref,
                       qs_ref, m_ref, l_ref, acc_ref, *, scale):
    """One (batch, q-tile, kv-tile) grid step of online-softmax SDPA.

    q_ref: (tq, D)   k_ref: (tk, D)   v_ref: (tk, Dv)   o_ref: (tq, Dv)
    qs_ref: (tq, D) bf16 scaled-q cache (computed once per q tile)
    m_ref/l_ref: (tq, 1) running max / running sum (f32)
    acc_ref:     (tq, Dv) f32 output accumulator
    """
    kv = pl.program_id(2)

    @pl.when(kv == 0)
    def _init():
        # The q block is identical for every kv step (its index_map ignores
        # the kv axis), so fold the compile-time 1/inv_scale into the bf16
        # cast once per (batch, q-tile) instead of re-doing it every step.
        qs_ref[...] = (q_ref[...] * scale).astype(jnp.bfloat16)
        m_ref[...] = jnp.full_like(m_ref, -jnp.inf)
        l_ref[...] = jnp.zeros_like(l_ref)
        acc_ref[...] = jnp.zeros_like(acc_ref)

    # NT contraction over the shared last dim (no explicit k.T / XLU
    # transpose); bf16 operands, f32 accumulation -> MXU-native on all gens.
    s = lax.dot_general(
        qs_ref[...], k_ref[...].astype(jnp.bfloat16),
        dimension_numbers=(((1,), (1,)), ((), ())),
        preferred_element_type=jnp.float32,
    )  # (tq, tk), f32

    m_prev = m_ref[...]
    m_new = jnp.maximum(m_prev, jnp.max(s, axis=-1, keepdims=True))
    alpha = jnp.exp(m_prev - m_new)   # rescale factor for previous blocks
    p = jnp.exp(s - m_new)            # unnormalized probabilities (f32)

    # TODO(synk): if DROPOUT_P were nonzero, apply an inverted-dropout mask
    # here with pltpu.prng_seed / pltpu.prng_random_bits; p == 0.0 -> identity.

    l_ref[...] = alpha * l_ref[...] + jnp.sum(p, axis=-1, keepdims=True)
    acc_ref[...] = alpha * acc_ref[...] + jnp.dot(
        p.astype(jnp.bfloat16), v_ref[...].astype(jnp.bfloat16),
        preferred_element_type=jnp.float32)
    m_ref[...] = m_new

    @pl.when(kv == pl.num_programs(2) - 1)
    def _finalize():
        # EUP reciprocal + vmul instead of a per-element VALU divide; runs
        # once per output tile (amortized over all kv steps).
        inv_l = pl.reciprocal(l_ref[...], approx=True)
        o_ref[...] = (acc_ref[...] * inv_l).astype(o_ref.dtype)


def _pick_tile(dim: int, target: int, prefer_align: int = 8) -> int:
    """Largest aligned divisor of `dim` that is <= `target`.

    Prefers `prefer_align`-aligned divisors, then 8-aligned (the TPU sublane
    constraint for a non-full second-minor block dim).  Falls back to the full
    dim (always a legal block shape) only if no aligned divisor exists.
    """
    if dim <= target:
        return dim
    for align in sorted({prefer_align, 8}, reverse=True):
        for t in range(min(target, dim), align - 1, -1):
            if dim % t == 0 and t % align == 0:
                return t
    return dim


def _vmem_limit_bytes() -> int:
    """Per-generation scoped-VMEM limit (v7x: 64 MiB physical; v5e/v6e: 128)."""
    try:
        cap = int(pltpu.get_tpu_info().vmem_capacity_bytes)
    except Exception:
        cap = 64 * 1024 * 1024
    # Leave headroom for Mosaic-internal scratch.
    return max(32 * 1024 * 1024, min(cap * 3 // 4, 100 * 1024 * 1024))


def sdpa_pallas(q, k, v, inv_scale_factor, *,
                tq_target=512, tk_target=512, collapse_kv=True):
    """q: (B, M, D), k: (B, N, D), v: (B, N, Dv) -> (B, M, Dv)."""
    B, M, D = q.shape
    Bk, N, Dk = k.shape
    Bv, Nv, Dv = v.shape
    assert Bk == B and Bv == B and Dk == D and Nv == N

    tq = _pick_tile(M, tq_target)
    # Megacore (v7x has 2 TCs): make sure the parallel grid axes offer at
    # least 2 programs; otherwise shrink the q tile.
    while B * (M // tq) < 2 and tq >= 16:
        smaller = _pick_tile(M, tq // 2)
        if smaller == tq:
            break
        tq = smaller

    # Collapse the kv axis entirely when both the resident K/V tiles and the
    # (tq, N) f32 score intermediate are small: single-pass softmax, no
    # per-step alpha rescale, no grid-step overhead.  Bounds chosen to stay
    # far under v7x's 64 MiB VMEM.
    kv_tile_bytes = N * (D + Dv) * q.dtype.itemsize
    score_bytes = tq * N * 4
    if collapse_kv and kv_tile_bytes <= 4 * 1024 * 1024 and score_bytes <= 4 * 1024 * 1024:
        tk = N
    else:
        tk = _pick_tile(N, tk_target, prefer_align=128)

    grid = (B, M // tq, N // tk)

    # inv_scale_factor is a trace-time Python constant: close over it instead
    # of shipping an SMEM operand.
    kernel = functools.partial(_flash_sdpa_kernel,
                               scale=float(1.0 / float(inv_scale_factor)))

    return pl.pallas_call(
        kernel,
        out_shape=jax.ShapeDtypeStruct((B, M, Dv), q.dtype),
        grid=grid,
        in_specs=[
            pl.BlockSpec((None, tq, D), lambda b, i, j: (b, i, 0)),   # q
            pl.BlockSpec((None, tk, D), lambda b, i, j: (b, j, 0)),   # k
            pl.BlockSpec((None, tk, Dv), lambda b, i, j: (b, j, 0)),  # v
        ],
        out_specs=pl.BlockSpec((None, tq, Dv), lambda b, i, j: (b, i, 0)),
        scratch_shapes=[
            pltpu.VMEM((tq, D), jnp.bfloat16),   # scaled q cache (per q tile)
            pltpu.VMEM((tq, 1), jnp.float32),    # running max  m
            pltpu.VMEM((tq, 1), jnp.float32),    # running sum  l
            pltpu.VMEM((tq, Dv), jnp.float32),   # accumulator  acc
        ],
        compiler_params=pltpu.CompilerParams(
            dimension_semantics=("parallel", "parallel", "arbitrary"),
            vmem_limit_bytes=_vmem_limit_bytes(),
        ),
    )(q, k, v)


def sdpa_reference(q, k, v, inv_scale_factor):
    qk = jnp.einsum("bmd,bnd->bmn", q, k) / inv_scale_factor
    probs = jax.nn.softmax(qk, axis=-1)
    return jnp.einsum("bmn,bnd->bmd", probs, v)


if __name__ == "__main__":
    # Small, self-consistent shapes in the spirit of the module's batched
    # attention; last dims are 128 (lane-dense).
    B, M, N, D, Dv = 2, 64, 256, 128, 128
    inv_scale_factor = float(D) ** 0.5

    key = jax.random.PRNGKey(0)
    kq, kk, kv_ = jax.random.split(key, 3)
    q1 = jax.random.normal(kq, (B, M, D), dtype=jnp.float32)
    k1 = jax.random.normal(kk, (B, N, D), dtype=jnp.float32)
    v1 = jax.random.normal(kv_, (B, N, Dv), dtype=jnp.float32)

    ref = sdpa_reference(q1, k1, v1, inv_scale_factor)

    # Path 1 (defaults): kv axis collapses -> single softmax pass per q tile.
    out1 = jax.block_until_ready(sdpa_pallas(q1, k1, v1, inv_scale_factor))
    # Path 2: forced small tiles -> exercises the multi-step online-softmax
    # accumulation path (4 kv steps).
    out2 = jax.block_until_ready(
        sdpa_pallas(q1, k1, v1, inv_scale_factor,
                    tq_target=32, tk_target=64, collapse_kv=False))

    assert out1.shape == (B, M, Dv)
    assert out2.shape == (B, M, Dv)
    # bf16 matmul operands (f32 accumulation) + online-softmax reassociation
    # + approx reciprocal => looser tolerance than strict-f32 torch semantics.
    assert jnp.allclose(out1, ref, atol=3e-2, rtol=3e-2)
    assert jnp.allclose(out2, ref, atol=3e-2, rtol=3e-2)

    print("KERNEL_OK")
</pallas_src>

<mosaic_0001>
module attributes {stable_mosaic.version = 11 : i64} {
  func.func @_flash_sdpa_kernel(%arg0: i32, %arg1: i32, %arg2: i32, %arg3: memref<1x64x128xf32, #tpu.memory_space<vmem>>, %arg4: memref<1x256x128xf32, #tpu.memory_space<vmem>>, %arg5: memref<1x256x128xf32, #tpu.memory_space<vmem>>, %arg6: memref<1x64x128xf32, #tpu.memory_space<vmem>>, %arg7: memref<64x128xbf16, #tpu.memory_space<vmem>>, %arg8: memref<64x1xf32, #tpu.memory_space<vmem>>, %arg9: memref<64x1xf32, #tpu.memory_space<vmem>>, %arg10: memref<64x128xf32, #tpu.memory_space<vmem>>) attributes {dimension_semantics = [#tpu.dimension_semantics<parallel>, #tpu.dimension_semantics<parallel>, #tpu.dimension_semantics<arbitrary>], iteration_bounds = array<i64: 2, 1, 1>, scalar_prefetch = 0 : i64, scratch_operands = 4 : i64, tpu.core_type = #tpu.core_type<tc>, window_params = [{transform_indices = @transform_0, window_bounds = array<i64: 1, 64, 128>}, {transform_indices = @transform_1, window_bounds = array<i64: 1, 256, 128>}, {transform_indices = @transform_2, window_bounds = array<i64: 1, 256, 128>}, {transform_indices = @transform_3, window_bounds = array<i64: 1, 64, 128>}]} {
    %c0_i32 = arith.constant 0 : i32
    %0 = arith.cmpi eq, %arg2, %c0_i32 : i32
    %1 = arith.extui %0 : i1 to i32
    %c0_i32_0 = arith.constant 0 : i32
    %2 = arith.cmpi ne, %1, %c0_i32_0 : i32
    scf.if %2 {
      %c0_25 = arith.constant 0 : index
      %c0_26 = arith.constant 0 : index
      %c0_27 = arith.constant 0 : index
      %37 = vector.load %arg3[%c0_25, %c0_26, %c0_27] : memref<1x64x128xf32, #tpu.memory_space<vmem>>, vector<1x64x128xf32>
      %38 = vector.shape_cast %37 : vector<1x64x128xf32> to vector<64x128xf32>
      %cst_28 = arith.constant 0.0883883461 : f32
      %39 = vector.broadcast %cst_28 : f32 to vector<64x128xf32>
      %40 = arith.mulf %38, %39 : vector<64x128xf32>
      %41 = arith.truncf %40 : vector<64x128xf32> to vector<64x128xbf16>
      %c0_29 = arith.constant 0 : index
      %c0_30 = arith.constant 0 : index
      %42 = vector.load %arg7[%c0_29, %c0_30] : memref<64x128xbf16, #tpu.memory_space<vmem>>, vector<64x128xbf16>
      tpu.vector_store %arg7[%c0_29, %c0_30], %41 {strides = array<i32>} : memref<64x128xbf16, #tpu.memory_space<vmem>>, vector<64x128xbf16>,
      %cst_31 = arith.constant 0xFF800000 : f32
      %43 = vector.broadcast %cst_31 : f32 to vector<64x1xf32>
      %c0_32 = arith.constant 0 : index
      %c0_33 = arith.constant 0 : index
      %44 = vector.load %arg8[%c0_32, %c0_33] : memref<64x1xf32, #tpu.memory_space<vmem>>, vector<64x1xf32>
      tpu.vector_store %arg8[%c0_32, %c0_33], %43 {strides = array<i32>} : memref<64x1xf32, #tpu.memory_space<vmem>>, vector<64x1xf32>,
      %cst_34 = arith.constant 0.000000e+00 : f32
      %45 = vector.broadcast %cst_34 : f32 to vector<64x1xf32>
      %c0_35 = arith.constant 0 : index
      %c0_36 = arith.constant 0 : index
      %46 = vector.load %arg9[%c0_35, %c0_36] : memref<64x1xf32, #tpu.memory_space<vmem>>, vector<64x1xf32>
      tpu.vector_store %arg9[%c0_35, %c0_36], %45 {strides = array<i32>} : memref<64x1xf32, #tpu.memory_space<vmem>>, vector<64x1xf32>,
      %cst_37 = arith.constant 0.000000e+00 : f32
      %47 = vector.broadcast %cst_37 : f32 to vector<64x128xf32>
      %c0_38 = arith.constant 0 : index
      %c0_39 = arith.constant 0 : index
      %48 = vector.load %arg10[%c0_38, %c0_39] : memref<64x128xf32, #tpu.memory_space<vmem>>, vector<64x128xf32>
      tpu.vector_store %arg10[%c0_38, %c0_39], %47 {strides = array<i32>} : memref<64x128xf32, #tpu.memory_space<vmem>>, vector<64x128xf32>,
    } else {
    }
    %c0 = arith.constant 0 : index
    %c0_1 = arith.constant 0 : index
    %3 = vector.load %arg7[%c0, %c0_1] : memref<64x128xbf16, #tpu.memory_space<vmem>>, vector<64x128xbf16>
    %c0_2 = arith.constant 0 : index
    %c0_3 = arith.constant 0 : index
    %c0_4 = arith.constant 0 : index
    %4 = vector.load %arg4[%c0_2, %c0_3, %c0_4] : memref<1x256x128xf32, #tpu.memory_space<vmem>>, vector<1x256x128xf32>
    %5 = vector.shape_cast %4 : vector<1x256x128xf32> to vector<256x128xf32>
    %6 = arith.truncf %5 : vector<256x128xf32> to vector<256x128xbf16>
    %cst = arith.constant dense<0.000000e+00> : vector<64x256xf32>
    %7 = tpu.matmul %3, %6, %cst {dimension_numbers = #tpu.dot_dimension_numbers<[1], [1], [0], [0], [0, 0, 1, 0], [], []>} : vector<64x128xbf16>, vector<256x128xbf16>, vector<64x256xf32> -> vector<64x256xf32>
    %c0_5 = arith.constant 0 : index
    %c0_6 = arith.constant 0 : index
    %8 = vector.load %arg8[%c0_5, %c0_6] : memref<64x1xf32, #tpu.memory_space<vmem>>, vector<64x1xf32>
    %cst_7 = arith.constant dense<0xFF800000> : vector<64xf32>
    %9 = vector.multi_reduction <maximumf>, %7, %cst_7 [1] : vector<64x256xf32> to vector<64xf32>
    %10 = vector.shape_cast %9 : vector<64xf32> to vector<64x1xf32>
    %11 = arith.maximumf %8, %10 : vector<64x1xf32>
    %12 = arith.subf %8, %11 : vector<64x1xf32>
    %13 = math.exp %12 : vector<64x1xf32>
    %14 = vector.broadcast %11 : vector<64x1xf32> to vector<64x256xf32>
    %15 = arith.subf %7, %14 : vector<64x256xf32>
    %16 = math.exp %15 : vector<64x256xf32>
    %c0_8 = arith.constant 0 : index
    %c0_9 = arith.constant 0 : index
    %17 = vector.load %arg9[%c0_8, %c0_9] : memref<64x1xf32, #tpu.memory_space<vmem>>, vector<64x1xf32>
    %18 = arith.mulf %13, %17 : vector<64x1xf32>
    %cst_10 = arith.constant dense<0.000000e+00> : vector<64xf32>
    %19 = vector.multi_reduction <add>, %16, %cst_10 [1] : vector<64x256xf32> to vector<64xf32>
    %20 = vector.shape_cast %19 : vector<64xf32> to vector<64x1xf32>
    %21 = arith.addf %18, %20 : vector<64x1xf32>
    %c0_11 = arith.constant 0 : index
    %c0_12 = arith.constant 0 : index
    %22 = vector.load %arg9[%c0_11, %c0_12] : memref<64x1xf32, #tpu.memory_space<vmem>>, vector<64x1xf32>
    tpu.vector_store %arg9[%c0_11, %c0_12], %21 {strides = array<i32>} : memref<64x1xf32, #tpu.memory_space<vmem>>, vector<64x1xf32>,
    %c0_13 = arith.constant 0 : index
    %c0_14 = arith.constant 0 : index
    %23 = vector.load %arg10[%c0_13, %c0_14] : memref<64x128xf32, #tpu.memory_space<vmem>>, vector<64x128xf32>
    %24 = vector.broadcast %13 : vector<64x1xf32> to vector<64x128xf32>
    %25 = arith.mulf %24, %23 : vector<64x128xf32>
    %26 = arith.truncf %16 : vector<64x256xf32> to vector<64x256xbf16>
    %c0_15 = arith.constant 0 : index
    %c0_16 = arith.constant 0 : index
    %c0_17 = arith.constant 0 : index
    %27 = vector.load %arg5[%c0_15, %c0_16, %c0_17] : memref<1x256x128xf32, #tpu.memory_space<vmem>>, vector<1x256x128xf32>
    %28 = vector.shape_cast %27 : vector<1x256x128xf32> to vector<256x128xf32>
    %29 = arith.truncf %28 : vector<256x128xf32> to vector<256x128xbf16>
    %cst_18 = arith.constant dense<0.000000e+00> : vector<64x128xf32>
    %30 = tpu.matmul %26, %29, %cst_18 {dimension_numbers = #tpu.dot_dimension_numbers<[1], [0], [0], [1], [0, 0, 1, 1], [], []>} : vector<64x256xbf16>, vector<256x128xbf16>, vector<64x128xf32> -> vector<64x128xf32>
    %31 = arith.addf %25, %30 : vector<64x128xf32>
    %c0_19 = arith.constant 0 : index
    %c0_20 = arith.constant 0 : index
    %32 = vector.load %arg10[%c0_19, %c0_20] : memref<64x128xf32, #tpu.memory_space<vmem>>, vector<64x128xf32>
    tpu.vector_store %arg10[%c0_19, %c0_20], %31 {strides = array<i32>} : memref<64x128xf32, #tpu.memory_space<vmem>>, vector<64x128xf32>,
    %c0_21 = arith.constant 0 : index
    %c0_22 = arith.constant 0 : index
    %33 = vector.load %arg8[%c0_21, %c0_22] : memref<64x1xf32, #tpu.memory_space<vmem>>, vector<64x1xf32>
    tpu.vector_store %arg8[%c0_21, %c0_22], %11 {strides = array<i32>} : memref<64x1xf32, #tpu.memory_space<vmem>>, vector<64x1xf32>,
    %c0_i32_23 = arith.constant 0 : i32
    %34 = arith.cmpi eq, %arg2, %c0_i32_23 : i32
    %35 = arith.extui %34 : i1 to i32
    %c0_i32_24 = arith.constant 0 : i32
    %36 = arith.cmpi ne, %35, %c0_i32_24 : i32
    scf.if %36 {
      %c0_25 = arith.constant 0 : index
      %c0_26 = arith.constant 0 : index
      %37 = vector.load %arg9[%c0_25, %c0_26] : memref<64x1xf32, #tpu.memory_space<vmem>>, vector<64x1xf32>
      %38 = tpu.reciprocal %37 {approx = true} : vector<64x1xf32> -> vector<64x1xf32>
      %c0_27 = arith.constant 0 : index
      %c0_28 = arith.constant 0 : index
      %39 = vector.load %arg10[%c0_27, %c0_28] : memref<64x128xf32, #tpu.memory_space<vmem>>, vector<64x128xf32>
      %40 = vector.broadcast %38 : vector<64x1xf32> to vector<64x128xf32>
      %41 = arith.mulf %39, %40 : vector<64x128xf32>
      %c0_29 = arith.constant 0 : index
      %c0_30 = arith.constant 0 : index
      %c0_31 = arith.constant 0 : index
      %42 = vector.load %arg6[%c0_29, %c0_30, %c0_31] : memref<1x64x128xf32, #tpu.memory_space<vmem>>, vector<1x64x128xf32>
      %43 = vector.shape_cast %42 : vector<1x64x128xf32> to vector<64x128xf32>
      %44 = vector.shape_cast %41 : vector<64x128xf32> to vector<1x64x128xf32>
      tpu.vector_store %arg6[%c0_29, %c0_30, %c0_31], %44 {strides = array<i32>} : memref<1x64x128xf32, #tpu.memory_space<vmem>>, vector<1x64x128xf32>,
    } else {
    }
    return
  }
  func.func @transform_0(%arg0: i32, %arg1: i32, %arg2: i32) -> (i32, i32, i32) {
    %c0_i32 = arith.constant 0 : i32
    %c0_i32_0 = arith.constant 0 : i32
    return %arg0, %arg1, %c0_i32 : i32, i32, i32
  }
  func.func @transform_1(%arg0: i32, %arg1: i32, %arg2: i32) -> (i32, i32, i32) {
    %c0_i32 = arith.constant 0 : i32
    %c0_i32_0 = arith.constant 0 : i32
    return %arg0, %arg2, %c0_i32 : i32, i32, i32
  }
  func.func @transform_2(%arg0: i32, %arg1: i32, %arg2: i32) -> (i32, i32, i32) {
    %c0_i32 = arith.constant 0 : i32
    %c0_i32_0 = arith.constant 0 : i32
    return %arg0, %arg2, %c0_i32 : i32, i32, i32
  }
  func.func @transform_3(%arg0: i32, %arg1: i32, %arg2: i32) -> (i32, i32, i32) {
    %c0_i32 = arith.constant 0 : i32
    %c0_i32_0 = arith.constant 0 : i32
    return %arg0, %arg1, %c0_i32 : i32, i32, i32
  }
}

</mosaic_0001>

<bundles_post_ra>
// kernel: tpu_custom_call.1
= control target key start
LH: loop header
LB: loop body
LE: loop exit
PB: predicated region body
PF: predicated region fallthrough
CT: control target
= control target key end

     0   :  { %s2138_s0 = inlined_call_operand.hbm [shape: f32[2,64,128], index: 0, kind: input, shape index: {}]   ;;  %s2139_s1 = inlined_call_operand.hbm [shape: f32[2,256,128], index: 1, kind: input, shape index: {}]   ;;  %s2140_s2 = inlined_call_operand.hbm [shape: f32[2,256,128], index: 2, kind: input, shape index: {}]   ;;  %s2141_s3 = inlined_call_operand.hbm [shape: f32[2,64,128], index: 3, kind: output, shape index: {}]  }
   0x1   :  { %2148 = sst [smem:[#allocation19_spill]] %s2139_s1 }
   0x2   :  { %8 = vsyncpa [#allocation7], 0 }
   0x3   :  { %10 = vsyncpa [#allocation7 + $0x1], 0 }
   0x4   :  { %11 = vsyncpa [#allocation10], 0 }
   0x5   :  { %13 = vsyncpa [#allocation10 + $0x1], 0 }
   0x6   :  { %14 = vsyncpa [#allocation8], 0 }
   0x7   :  { %16 = vsyncpa [#allocation8 + $0x1], 0  ;;  %s1575_s12 = smov 0   ;;  %s1577_s13 = smov 0  }
   0x8   :  { %s1579_s14 = smov 0   ;;  %s1581_s15 = smov 0  }
   0x9   :  { %s1583_s16 = smov 0   ;;  %s1585_s17 = smov 0  }
   0xa LB: > { %2149 = sst [smem:[#allocation16_spill]] %s1530_s14  ;;  %s1606_s18 = sadd.s32 4294967295, %s1542_s17   ;;  %s1542_s17 = sphi %s1585_s17, %s22_s17   ;;  %s1538_s16 = sphi %s1583_s16, %s2172_s16   ;;  %s1534_s15 = sphi %s1581_s15, %s2171_s15   ;;  %s1530_s14 = sphi %s1579_s14, %s2167_s14   ;;  %s1526_s13 = sphi %s1577_s13, %s2170_s13   ;;  %s1522_s12 = sphi %s1575_s12, %s2169_s12  }
   0xb   : > { %s1131_s19 = sadd.s32 4294967294, %s1542_s17   ;;  %s41_s20 = sadd.s32 1, %s1538_s16 }
   0xc   : > { %s50_s21 = sadd.s32 1, %s1530_s14  ;;  %p43_p0 = scmp.ge.s32.totalorder %s41_s20, 2 }
   0xd   : > { %p57_p1 = scmp.ne.s32.totalorder %s1530_s14, %s1526_s13  ;;  %p58_p2 = scmp.eq.s32.totalorder %s1542_s17, 0 }
   0xe   : > { %p63_p3 = scmp.ne.s32.totalorder %s1526_s13, %s1522_s12  ;;  %s2174_s20 = smov (%p43_p0, %s41_s20), 0 }
   0xf   : > { %2150 = sst [smem:[#allocation17_spill]] %s2174_s20  ;;  %p1618_p4 = por %p58_p2, %p57_p1 }
  0x10   : > { %p64_p5 = scmp.eq.s32.totalorder %s1606_s18, 0  ;;  %s45_s23 = ssub.s32 %s1538_s16, %s2174_s20 }
  0x11   : > { %p145_p6 = scmp.eq.s32.totalorder %s1606_s18, 1  ;;  %p48_p7 = scmp.eq.s32.totalorder %s45_s23, 0 }
  0x12   : > { %p1626_p8 = por %p64_p5, %p63_p3  ;;  %p151_p10 = scmp.eq.s32.totalorder %s1131_s19, 1 }
  0x13   : > { %p1630_p9 = por %p145_p6, %p57_p1  ;;  %p1243_p13 = scmp.lt.s32.totalorder %s1542_s17, 2 }
  0x14   : > { %s2152_s24 = scalar_select %p1626_p8, 1, 0 }
  0x15   : > { %s2153_s25 = scalar_select %p1630_p9, 1, 0 }
  0x16   : > { %s1635_s26 = scalar_select %p48_p7, %s1530_s14, %s50_s21  }
  0x17   : > { %p1637_p11 = por %p151_p10, %p63_p3  ;;  %s1644_s28 = sand.u32 1, %s1530_s14  }
  0x18   : > { %2154 = sst [smem:[#allocation18_spill]] %s1635_s26  ;;  %p1648_p0 = pnand %p1243_p13, %p1618_p4 }
  0x19   : > { %s2155_s27 = scalar_select %p1637_p11, 1, 0 }
  0x1a   : > { %s194_s30 = sand.u32 1, %s1542_s17   ;;  %s1137_s4 = sshll.u32 %s1644_s28, 8 }
  0x1b   : > { %s1154_s5 = sshll.u32 %s1538_s16, 12  ;;  %s198_s6 = scalar_lea.vmem [#allocation9], %s1137_s4 }
  0x1c   : > { %s207_s7 = sshll.u32 %s198_s6, 4  ;;  %s2157_s1 = sld [smem:[#allocation19_spill]]  ;;  %s1664_s7 = int_to_ptr.vmem [resolvable:$true] %s207_s7 }
  0x1d   : > { %s1666_s11 = scalar_lea.sflag [#allocation10], %s194_s30  ;;  %p1672_p2 = pneg %p1648_p0 }
  0x22   : > { %s1662_s10 = scalar_lea.hbm %s2157_s1, %s1154_s5  ;;  %s1371_s6 = scalar_lea.hbm %s2157_s1, 8192 }
  0x23   : > { %s1366_s19 = scalar_lea.hbm %s1662_s10, 4096  ;;  %p1372_p5 = scmp.lt.u32.totalorder %s1662_s10, %s2157_s1 }
  0x24   : > { %p1367_p1 = scmp.ne.s32.totalorder %s1662_s10, %s1366_s19  ;;  %p1373_p6 = scmp.lt.u32.totalorder %s1371_s6, %s1366_s19 }
  0x25   : > { %p1375_p10 = scmp.lt.u32.totalorder %s1366_s19, %s1662_s10 }
  0x26   : > { %p1369_p3 = pnand %p1672_p2, %p1367_p1  ;;  %p1374_p7 = por %p1373_p6, %p1372_p5 }
  0x28   : > { %p1370_p4 = pneg %p1369_p3  ;;  %p1376_p13 = por %p1375_p10, %p1374_p7 }
  0x2a   : > { %p1377_p12 = pnand %p1376_p13, %p1370_p4 }
  0x2c   : > { %1380 = shalt.err (!%p1377_p12)
}
  0x2d   : > { %s1381_s30 = scalar_lea.vmem %s1664_s7, 4096  ;;  %s1544_s22 = smov [#allocation9]  }
  0x2e   : > { %p1382_p1 = scmp.ne.s32.totalorder %s1664_s7, %s1381_s30  ;;  %s1386_s23 = sshll.u32 %s1544_s22, 4  ;;  %s1387_s23 = int_to_ptr.vmem [resolvable:$false] %s1386_s23 }
  0x2f   : > { %s1388_s8 = scalar_lea.vmem %s1387_s23, 8192  ;;  %p1389_p9 = scmp.lt.s32.totalorder %s1664_s7, %s1387_s23 }
  0x30   : > { %p1384_p3 = pnand %p1382_p1, %p1672_p2  ;;  %p1390_p8 = scmp.lt.s32.totalorder %s1388_s8, %s1381_s30 }
  0x32   : > { %p1385_p11 = pneg %p1384_p3  ;;  %p1391_p5 = por %p1390_p8, %p1389_p9 }
  0x34   : > { %p1392_p6 = pnand %p1391_p5, %p1385_p11 }
  0x36   : > { %1395 = shalt.err (!%p1392_p6)
}
  0x37   : > { %s2146_s19 = smov 128   ;;  %s1546_s6 = smov 8  }
  0x38   : > { %1235 = dma.hbm_to_vmem [thread:$0]  (!%p1648_p0), %s1662_s10, 4096, %s1664_s7, %s1666_s11, %s2146_s19, %s2146_s19, %s1546_s6  }
  0x39   : > { %s1704_s22 = scalar_lea.hbm %s2140_s2, %s1154_s5  ;;  %p1143_p8 = scmp.ge.s32.totalorder %s1542_s17, 1 }
  0x3a   : > { %s221_s23 = scalar_lea.vmem [#allocation11], %s1137_s4  ;;  %p238_p9 = scmp.lt.s32.totalorder %s1542_s17, 3 }
  0x3b   : > { %s230_s8 = sshll.u32 %s221_s23, 4  ;;  %s1134_s20 = sshll.u32 %s1644_s28, 6  ;;  %s1721_s8 = int_to_ptr.vmem [resolvable:$true] %s230_s8 }
  0x3c   : > { %p1710_p11 = pnand %p1143_p8, %p238_p9  ;;  %s1153_s26 = sshll.u32 %s1538_s16, 10 }
  0x3d   : > { %s1719_s10 = scalar_lea.hbm %s2138_s0, %s1153_s26  ;;  %s175_s4 = scalar_lea.vmem [#allocation6], %s1134_s20 }
  0x3e   : > { %s2159_s1 = scalar_select %p1710_p11, 1, 0 }
  0x3f   : > { %s184_s5 = sshll.u32 %s175_s4, 4  ;;  %s172_s9 = scalar_lea.sflag [#allocation7], %s1644_s28  ;;  %s1723_s5 = int_to_ptr.vmem [resolvable:$true] %s184_s5 }
  0x40   : > { %s1396_s30 = scalar_lea.hbm %s1719_s10, 1024  ;;  %s1401_s26 = scalar_lea.hbm %s2138_s0, 2048 }
  0x41   : > { %p1397_p12 = scmp.ne.s32.totalorder %s1719_s10, %s1396_s30  ;;  %p1402_p10 = scmp.lt.u32.totalorder %s1719_s10, %s2138_s0 }
  0x42   : > { %p1403_p13 = scmp.lt.u32.totalorder %s1401_s26, %s1396_s30  ;;  %p1405_p3 = scmp.lt.u32.totalorder %s1396_s30, %s1719_s10 }
  0x43   : > { %p1399_p4 = pnand %p1397_p12, %p1672_p2 }
  0x44   : > { %p1404_p1 = por %p1403_p13, %p1402_p10 }
  0x45   : > { %p1400_p7 = pneg %p1399_p4 }
  0x46   : > { %p1406_p5 = por %p1405_p3, %p1404_p1 }
  0x48   : > { %p1407_p6 = pnand %p1406_p5, %p1400_p7 }
  0x4a   : > { %1410 = shalt.err (!%p1407_p6)
}
  0x4b   : > { %s1411_s20 = scalar_lea.vmem %s1723_s5, 1024  ;;  %s1547_s4 = smov [#allocation6]  }
  0x4c   : > { %p1412_p8 = scmp.ne.s32.totalorder %s1723_s5, %s1411_s20  ;;  %s1416_s23 = sshll.u32 %s1547_s4, 4  ;;  %s1417_s23 = int_to_ptr.vmem [resolvable:$false] %s1416_s23 }
  0x4d   : > { %s1418_s19 = scalar_lea.vmem %s1417_s23, 2048  ;;  %p1419_p4 = scmp.lt.s32.totalorder %s1723_s5, %s1417_s23 }
  0x4e   : > { %p1414_p9 = pnand %p1412_p8, %p1672_p2  ;;  %p1420_p11 = scmp.lt.s32.totalorder %s1418_s19, %s1411_s20 }
  0x50   : > { %p1415_p12 = pneg %p1414_p9  ;;  %p1421_p10 = por %p1420_p11, %p1419_p4 }
  0x52   : > { %p1422_p13 = pnand %p1421_p10, %p1415_p12 }
  0x54   : > { %1425 = shalt.err (!%p1422_p13)
}
  0x55   : > { %s2160_s30 = smov 128   ;;  %s1426_s14 = scalar_lea.hbm %s1704_s22, 4096 }
  0x56   : > { %1232 = dma.hbm_to_vmem [thread:$0]  (!%p1648_p0), %s1719_s10, 1024, %s1723_s5, %s172_s9, %s2160_s30, %s2160_s30, %s1546_s6  }
  0x57   : > { %p1427_p7 = scmp.ne.s32.totalorder %s1704_s22, %s1426_s14  ;;  %s1431_s20 = scalar_lea.hbm %s2140_s2, 8192 }
  0x58   : > { %p1432_p3 = scmp.lt.u32.totalorder %s1704_s22, %s2140_s2  ;;  %p1433_p5 = scmp.lt.u32.totalorder %s1431_s20, %s1426_s14 }
  0x59   : > { %p1429_p11 = pnand %p1427_p7, %p1672_p2  ;;  %p1435_p8 = scmp.lt.u32.totalorder %s1426_s14, %s1704_s22 }
  0x5a   : > { %p1434_p6 = por %p1433_p5, %p1432_p3 }
  0x5b   : > { %p1430_p1 = pneg %p1429_p11 }
  0x5c   : > { %p1436_p9 = por %p1435_p8, %p1434_p6 }
  0x5e   : > { %p1437_p12 = pnand %p1436_p9, %p1430_p1 }
  0x60   : > { %1440 = shalt.err (!%p1437_p12)
}
  0x61   : > { %s1441_s28 = scalar_lea.vmem %s1721_s8, 4096  ;;  %s1548_s10 = smov [#allocation11]  }
  0x62   : > { %p1442_p4 = scmp.ne.s32.totalorder %s1721_s8, %s1441_s28  ;;  %s1446_s5 = sshll.u32 %s1548_s10, 4  ;;  %s1447_s5 = int_to_ptr.vmem [resolvable:$false] %s1446_s5 }
  0x63   : > { %s1448_s9 = scalar_lea.vmem %s1447_s5, 8192  ;;  %p1449_p7 = scmp.lt.s32.totalorder %s1721_s8, %s1447_s5 }
  0x64   : > { %p1444_p10 = pnand %p1442_p4, %p1672_p2  ;;  %p1450_p11 = scmp.lt.s32.totalorder %s1448_s9, %s1441_s28 }
  0x66   : > { %p1445_p13 = pneg %p1444_p10  ;;  %p1451_p3 = por %p1450_p11, %p1449_p7 }
  0x68   : > { %p1452_p5 = pnand %p1451_p3, %p1445_p13 }
  0x6a   : > { %1455 = shalt.err (!%p1452_p5)
}
  0x6b   : > { %1238 = dma.hbm_to_vmem [thread:$0]  (!%p1648_p0), %s1704_s22, 4096, %s1721_s8, %s1666_s11, %s2160_s30, %s2160_s30, %s1546_s6  }
  0x6c   : > { %p2161_p2 = scmp.ne.s32.totalorder %s2159_s1, 0 }
  0x6d   : > { %s1780_s21 = sand.u32 (!%p2161_p2), 1, %s1526_s13   ;;  %p2162_p1 = scmp.ne.s32.totalorder (!%p2161_p2), %s2152_s24, 0 }
  0x6e   : > { %242 = sbr.rel (%p2161_p2) target bundleno = 1029 (0x405), region = 32  ;;  %s1144_s19 = sshll.u32 (!%p2161_p2), %s1780_s21, 6 }
  0x6f   : > { %s245_s14 = scalar_lea.sflag (!%p2161_p2), [#allocation7], %s1780_s21  ;;  %s1786_s29 = scalar_lea.vmem (!%p2161_p2), [#allocation6], %s1144_s19 }
  0x75   : > { %1509 = dma.done.wait (%p2162_p1), %s245_s14, 1024  }
  0x76   : > { %1511 = vsyncadd (%p2162_p1), %s245_s14, 4294966272  ;;  %s253_s1 = sand.u32 1, %s1606_s18   ;;  %s1145_s11 = sshll.u32 %s1780_s21, 8 }
  0x77   : > { %s254_s6 = scalar_lea.sflag [#allocation10], %s253_s1  ;;  %s1796_s22 = scalar_lea.vmem [#allocation9], %s1145_s11 }
  0x78   : > { %1513 = dma.done.wait (%p2162_p1), %s254_s6, 8192  }
  0x79   : > { %1515 = vsyncadd (%p2162_p1), %s254_s6, 4294959104  ;;  %v377_v0 = vld [vmem:[%s1796_s22 + $0x80] sm:$0xff]  ;;  %v378_v1 = vld [vmem:[%s1796_s22 + $0x88] sm:$0xff]  ;;  %vm332_vm0 = vcmask 7168   ;;  %s1908_s18 = scalar_lea.vmem [#allocation11], %s1145_s11  ;;  %s2072_s24 = scalar_lea.vmem [#allocation12], %s1144_s19 }
  0x7a   : > { %v361_v2 = vld [vmem:[%s1796_s22] sm:$0xff]  ;;  %v401_v3 = vpack.c.bf16 %v378_v1, %v377_v0  ;;  %v362_v4 = vld [vmem:[%s1796_s22 + $0x8] sm:$0xff]  ;;  %v379_v5 = vld [vmem:[%s1796_s22 + $0x90] sm:$0xff]  ;;  %s991_s8 = sshll.u32 %s2072_s24, 4  ;;  %s1156_s30 = sshll.u32 %s1534_s15, 10  ;;  %s2082_s8 = int_to_ptr.vmem [resolvable:$true] %s991_s8 }
  0x7b   : > { %v380_v6 = vld [vmem:[%s1796_s22 + $0x98] sm:$0xff]  ;;  %v393_v7 = vpack.c.bf16 %v362_v4, %v361_v2  ;;  %v363_v9 = vld [vmem:[%s1796_s22 + $0x10] sm:$0xff]  ;;  %v381_v11 = vld [vmem:[%s1796_s22 + $0xa0] sm:$0xff]  ;;  %v1549_v4 = vmov -inf   ;;  %s2088_s20 = scalar_lea.hbm %s2141_s3, %s1156_s30  ;;  %s976_s4 = scalar_lea.sflag [#allocation8], %s1780_s21 }
  0x7c   : > { %v402_v8 = vpack.c.bf16 %v380_v6, %v379_v5  ;;  %1157 = vmatprep.subr.bf16.mxu0 %v401_v3  ;;  %v364_v10 = vld [vmem:[%s1796_s22 + $0x18] sm:$0xff]  ;;  %v382_v12 = vld [vmem:[%s1796_s22 + $0xa8] sm:$0xff]  ;;  %v308_v15 = vld [vmem:[%s1786_s29] sm:$0xff]  ;;  %333 = vst.msk [vmem:[#allocation3] sm:$0xff] %vm332_vm0, %v1549_v4  ;;  %s1456_s23 = scalar_lea.vmem %s2082_s8, 1024  ;;  %p2163_p6 = scmp.ne.s32.totalorder %s2153_s25, 0 }
  0x7d   : > { %1158 = vmatpush3.bf16.xpose.msra.mxu0 %v393_v7  ;;  %v394_v13 = vpack.c.bf16 %v364_v10, %v363_v9  ;;  %v403_v14 = vpack.c.bf16 %v382_v12, %v381_v11  ;;  %v309_v16 = vld [vmem:[%s1786_s29 + $0x8] sm:$0xff]  ;;  %v316_v17 = vmul.f32 0.088388346, %v308_v15  ;;  %v365_v19 = vld [vmem:[%s1796_s22 + $0x20] sm:$0xff]  ;;  %v383_v21 = vld [vmem:[%s1796_s22 + $0xb0] sm:$0xff]  ;;  %334 = vst.msk [vmem:[#allocation3 + $0x8] sm:$0xff] %vm332_vm0, %v1549_v4  ;;  %p1457_p0 = scmp.ne.s32.totalorder %s2082_s8, %s1456_s23 }
  0x7e   : > { %1159 = vmatprep.subr.bf16.mxu0 %v402_v8  ;;  %v317_v18 = vmul.f32 0.088388346, %v309_v16  ;;  %v366_v20 = vld [vmem:[%s1796_s22 + $0x28] sm:$0xff]  ;;  %v384_v22 = vld [vmem:[%s1796_s22 + $0xb8] sm:$0xff]  ;;  %v367_v26 = vld [vmem:[%s1796_s22 + $0x30] sm:$0xff]  ;;  %335 = vst.msk [vmem:[#allocation3 + $0x10] sm:$0xff] %vm332_vm0, %v1549_v4 }
  0x7f   : > { %v395_v24 = vpack.c.bf16 %v366_v20, %v365_v19  ;;  %v404_v25 = vpack.c.bf16 %v384_v22, %v383_v21  ;;  %v368_v27 = vld [vmem:[%s1796_s22 + $0x38] sm:$0xff]  ;;  %v385_v28 = vld [vmem:[%s1796_s22 + $0xc0] sm:$0xff]  ;;  %v386_v29 = vld [vmem:[%s1796_s22 + $0xc8] sm:$0xff]  ;;  %336 = vst.msk [vmem:[#allocation3 + $0x18] sm:$0xff] %vm332_vm0, %v1549_v4  ;;  %v1550_v22 = vmov 0   ;;  %p1458_p8 = pnand %p1457_p0, %p2163_p6  ;;  %s1552_s15 = smov [#allocation12]  }
  0x80   : > { %v324_v23 = vpack.c.bf16 %v317_v18, %v316_v17  ;;  %v396_v30 = vpack.c.bf16 %v368_v27, %v367_v26  ;;  %v405_v31 = vpack.c.bf16 %v386_v29, %v385_v28  ;;  %v369_v32 = vld [vmem:[%s1796_s22 + $0x40] sm:$0xff]  ;;  %v370_v33 = vld [vmem:[%s1796_s22 + $0x48] sm:$0xff]  ;;  %v387_v34 = vld [vmem:[%s1796_s22 + $0xd0] sm:$0xff]  ;;  %337 = vst.msk [vmem:[#allocation3 + $0x20] sm:$0xff] %vm332_vm0, %v1549_v4  ;;  %1300 = vset.pattern.permute.xlu0 %v1550_v22  ;;  %s1460_s28 = sshll.u32 %s1552_s15, 4  ;;  %s1461_s28 = int_to_ptr.vmem [resolvable:$false] %s1460_s28 }
  0x81   : > { %v388_v35 = vld [vmem:[%s1796_s22 + $0xd8] sm:$0xff]  ;;  %v397_v36 = vpack.c.bf16 %v370_v33, %v369_v32  ;;  %v371_v38 = vld [vmem:[%s1796_s22 + $0x50] sm:$0xff]  ;;  %v389_v40 = vld [vmem:[%s1796_s22 + $0xe0] sm:$0xff]  ;;  %338 = vst.msk [vmem:[#allocation3 + $0x28] sm:$0xff] %vm332_vm0, %v1549_v4  ;;  %1301 = vset.pattern.permute.xlu1 %v1550_v22  ;;  %p1459_p9 = pneg %p1458_p8  ;;  %s1462_s10 = scalar_lea.vmem %s1461_s28, 2048 }
  0x82   : > { %1173 = vmatprep.mubr.bf16.mxu0 %v324_v23  ;;  %v406_v37 = vpack.c.bf16 %v388_v35, %v387_v34  ;;  %v372_v39 = vld [vmem:[%s1796_s22 + $0x58] sm:$0xff]  ;;  %v390_v41 = vld [vmem:[%s1796_s22 + $0xe8] sm:$0xff]  ;;  %v373_v44 = vld [vmem:[%s1796_s22 + $0x60] sm:$0xff]  ;;  %339 = vst.msk [vmem:[#allocation3 + $0x30] sm:$0xff] %vm332_vm0, %v1549_v4  ;;  %p1463_p12 = scmp.lt.s32.totalorder %s2082_s8, %s1461_s28  ;;  %p1464_p4 = scmp.lt.s32.totalorder %s1462_s10, %s1456_s23 }
  0x83   : > { %v398_v42 = vpack.c.bf16 %v372_v39, %v371_v38  ;;  %v407_v43 = vpack.c.bf16 %v390_v41, %v389_v40  ;;  %v374_v45 = vld [vmem:[%s1796_s22 + $0x68] sm:$0xff]  ;;  %v391_v46 = vld [vmem:[%s1796_s22 + $0xf0] sm:$0xff]  ;;  %v392_v47 = vld [vmem:[%s1796_s22 + $0xf8] sm:$0xff]  ;;  %340 = vst.msk [vmem:[#allocation3 + $0x38] sm:$0xff] %vm332_vm0, %v1549_v4 }
  0x84   : > { %v399_v48 = vpack.c.bf16 %v374_v45, %v373_v44  ;;  %v408_v49 = vpack.c.bf16 %v392_v47, %v391_v46  ;;  %v375_v50 = vld [vmem:[%s1796_s22 + $0x70] sm:$0xff]  ;;  %v376_v51 = vld [vmem:[%s1796_s22 + $0x78] sm:$0xff]  ;;  %v312_v58 = vld [vmem:[%s1786_s29 + $0x20] sm:$0xff]  ;;  %p1465_p10 = por %p1464_p4, %p1463_p12 }
  0x85   : > { %1160 = vmatpush3.bf16.xpose.msra.mxu0 %v394_v13  ;;  %v400_v52 = vpack.c.bf16 %v376_v51, %v375_v50  ;;  %v310_v53 = vld [vmem:[%s1786_s29 + $0x10] sm:$0xff]  ;;  %v311_v54 = vld [vmem:[%s1786_s29 + $0x18] sm:$0xff]  ;;  %v313_v59 = vld [vmem:[%s1786_s29 + $0x28] sm:$0xff]  ;;  %v320_v60 = vmul.f32 0.088388346, %v312_v58 }
  0x86   : > { %1161 = vmatprep.subr.bf16.mxu0 %v403_v14  ;;  %v318_v55 = vmul.f32 0.088388346, %v310_v53  ;;  %v319_v56 = vmul.f32 0.088388346, %v311_v54  ;;  %v321_v61 = vmul.f32 0.088388346, %v313_v59  ;;  %p1466_p13 = pnand %p1465_p10, %p1459_p9 }
  0x87   : > { %v314_v63 = vld [vmem:[%s1786_s29 + $0x30] sm:$0xff]  ;;  %v315_v0 = vld [vmem:[%s1786_s29 + $0x38] sm:$0xff]  ;;  %v772_v32 = vld [vmem:[%s1908_s18 + $0x88] sm:$0xff] }
  0x88   : > { %v325_v57 = vpack.c.bf16 %v319_v56, %v318_v55  ;;  %v326_v62 = vpack.c.bf16 %v321_v61, %v320_v60  ;;  %v322_v1 = vmul.f32 0.088388346, %v314_v63  ;;  %v323_v2 = vmul.f32 0.088388346, %v315_v0  ;;  %v755_v33 = vld [vmem:[%s1908_s18] sm:$0xff]  ;;  %v756_v35 = vld [vmem:[%s1908_s18 + $0x8] sm:$0xff] }
  0x89   : > { %v787_v38 = vpack.c.bf16 %v756_v35, %v755_v33  ;;  %v757_v40 = vld [vmem:[%s1908_s18 + $0x10] sm:$0xff]  ;;  %v758_v41 = vld [vmem:[%s1908_s18 + $0x18] sm:$0xff]  ;;  %v759_v46 = vld [vmem:[%s1908_s18 + $0x20] sm:$0xff] }
  0x8a   : > { %v327_v3 = vpack.c.bf16 %v323_v2, %v322_v1  ;;  %v788_v44 = vpack.c.bf16 %v758_v41, %v757_v40  ;;  %v760_v47 = vld [vmem:[%s1908_s18 + $0x28] sm:$0xff]  ;;  %v777_v54 = vld [vmem:[%s1908_s18 + $0xb0] sm:$0xff]  ;;  %v778_v55 = vld [vmem:[%s1908_s18 + $0xb8] sm:$0xff] }
  0x8b   : > { %v761_v58 = vld [vmem:[%s1908_s18 + $0x30] sm:$0xff]  ;;  %v762_v59 = vld [vmem:[%s1908_s18 + $0x38] sm:$0xff]  ;;  %v779_v0 = vld [vmem:[%s1908_s18 + $0xc0] sm:$0xff] }
  0x8c   : > { %v790_v61 = vpack.c.bf16 %v762_v59, %v761_v58  ;;  %v780_v1 = vld [vmem:[%s1908_s18 + $0xc8] sm:$0xff]  ;;  %v763_v4 = vld [vmem:[%s1908_s18 + $0x40] sm:$0xff]  ;;  %v781_v22 = vld [vmem:[%s1908_s18 + $0xd0] sm:$0xff] }
  0x8d   : > { %1162 = vmatpush3.bf16.xpose.msra.mxu0 %v395_v24  ;;  %v767_v41 = vld [vmem:[%s1908_s18 + $0x60] sm:$0xff]  ;;  %v2001_v59 = vld [vmem:[#allocation3 + $0x30] sm:$0xff] }
  0x8e   : > { %1163 = vmatprep.subr.bf16.mxu0 %v404_v25 }
  0x95   : > { %1164 = vmatpush3.bf16.xpose.msra.mxu0 %v396_v30  ;;  %v1551_v30 = vmov 0.0  }
  0x96   : > { %1165 = vmatprep.subr.bf16.mxu0 %v405_v31  ;;  %341 = vst.msk [vmem:[#allocation4] sm:$0xff] %vm332_vm0, %v1551_v30  ;;  %342 = vst.msk [vmem:[#allocation4 + $0x8] sm:$0xff] %vm332_vm0, %v1551_v30  ;;  %v771_v31 = vld [vmem:[%s1908_s18 + $0x80] sm:$0xff] }
  0x97   : > { %343 = vst.msk [vmem:[#allocation4 + $0x10] sm:$0xff] %vm332_vm0, %v1551_v30  ;;  %344 = vst.msk [vmem:[#allocation4 + $0x18] sm:$0xff] %vm332_vm0, %v1551_v30  ;;  %v795_v34 = vpack.c.bf16 %v772_v32, %v771_v31  ;;  %v766_v31 = vld [vmem:[%s1908_s18 + $0x58] sm:$0xff] }
  0x98   : > { %345 = vst.msk [vmem:[#allocation4 + $0x20] sm:$0xff] %vm332_vm0, %v1551_v30  ;;  %346 = vst.msk [vmem:[#allocation4 + $0x28] sm:$0xff] %vm332_vm0, %v1551_v30 }
  0x99   : > { %347 = vst.msk [vmem:[#allocation4 + $0x30] sm:$0xff] %vm332_vm0, %v1551_v30  ;;  %348 = vst.msk [vmem:[#allocation4 + $0x38] sm:$0xff] %vm332_vm0, %v1551_v30  ;;  %1181 = vmatprep.subr.bf16.mxu1 %v795_v34  ;;  %v765_v30 = vld [vmem:[%s1908_s18 + $0x50] sm:$0xff]  ;;  %v1969_v34 = vld [vmem:[#allocation3 + $0x20] sm:$0xff] }
  0x9a   : > { %1182 = vmatpush3.bf16.msra.mxu1 %v787_v38  ;;  %v792_v33 = vpack.c.bf16 %v766_v31, %v765_v30 }
  0x9d   : > { %1166 = vmatpush3.bf16.xpose.msra.mxu0 %v397_v36  ;;  %v773_v36 = vld [vmem:[%s1908_s18 + $0x90] sm:$0xff] }
  0x9e   : > { %1167 = vmatprep.subr.bf16.mxu0 %v406_v37  ;;  %v774_v37 = vld [vmem:[%s1908_s18 + $0x98] sm:$0xff] }
  0x9f   : > { %v796_v39 = vpack.c.bf16 %v774_v37, %v773_v36  ;;  %v783_v36 = vld [vmem:[%s1908_s18 + $0xe0] sm:$0xff]  ;;  %v784_v37 = vld [vmem:[%s1908_s18 + $0xe8] sm:$0xff] }
  0xa0   : > { %v801_v40 = vpack.c.bf16 %v784_v37, %v783_v36 }
  0xa1   : > { %1183 = vmatprep.subr.bf16.mxu1 %v796_v39  ;;  %v1978_v39 = vld [vmem:[#allocation3 + $0x28] sm:$0xff] }
  0xa2   : > { %1184 = vmatpush3.bf16.msra.mxu1 %v788_v44 }
  0xa5   : > { %1168 = vmatpush3.bf16.xpose.msra.mxu0 %v398_v42  ;;  %v775_v42 = vld [vmem:[%s1908_s18 + $0xa0] sm:$0xff] }
  0xa6   : > { %1169 = vmatprep.subr.bf16.mxu0 %v407_v43  ;;  %v776_v43 = vld [vmem:[%s1908_s18 + $0xa8] sm:$0xff] }
  0xa7   : > { %v797_v45 = vpack.c.bf16 %v776_v43, %v775_v42  ;;  %v768_v42 = vld [vmem:[%s1908_s18 + $0x68] sm:$0xff] }
  0xa8   : > { %v793_v44 = vpack.c.bf16 %v768_v42, %v767_v41 }
  0xa9   : > { %1185 = vmatprep.subr.bf16.mxu1 %v797_v45 }
  0xad   : > { %1170 = vmatpush3.bf16.xpose.msra.mxu0 %v399_v48  ;;  %v789_v48 = vpack.c.bf16 %v760_v47, %v759_v46 }
  0xae   : > { %1171 = vmatprep.subr.bf16.mxu0 %v408_v49  ;;  %v1922_v49 = vld [vmem:[#allocation3] sm:$0xff] }
  0xaf   : > { %1186 = vmatpush3.bf16.msra.mxu1 %v789_v48  ;;  %v785_v48 = vld [vmem:[%s1908_s18 + $0xf0] sm:$0xff] }
  0xb5   : > { %1172 = vmatpush3.bf16.xpose.msra.mxu0 %v400_v52  ;;  %v1927_v52 = vld [vmem:[#allocation3 + $0x8] sm:$0xff] }
  0xbc   : > { %1174 = vmatmul.mubr.bf16.vlgmr.msra.gmra.mrb[0].mxu0 %v324_v23 }
  0xbd   : > { %1175 = vmatprep.mubr.bf16.mxu0 %v325_v57 }
  0xc4   : > { %1176 = vmatmul.mubr.bf16.gmra.mrb[4].mxu0 %v325_v57  ;;  %v798_v57 = vpack.c.bf16 %v778_v55, %v777_v54  ;;  %v769_v55 = vld [vmem:[%s1908_s18 + $0x70] sm:$0xff] }
  0xc5   : > { %1177 = vmatprep.mubr.bf16.mxu0 %v326_v62 }
  0xc6   : > { %1187 = vmatprep.subr.bf16.mxu1 %v798_v57 }
  0xc7   : > { %1188 = vmatpush3.bf16.msra.mxu1 %v790_v61 }
  0xcc   : > { %1178 = vmatmul.mubr.bf16.gmra.mrb[8].mxu0 %v326_v62  ;;  %v1941_v62 = vld [vmem:[#allocation3 + $0x10] sm:$0xff] }
  0xcd   : > { %1179 = vmatprep.mubr.bf16.mxu0 %v327_v3 }
  0xd4   : > { %1180 = vmatmul.mubr.bf16.gmra.mrb[12].mxu0 %v327_v3  ;;  %v799_v3 = vpack.c.bf16 %v780_v1, %v779_v0  ;;  %v2004_v0 = vld [vmem:[#allocation3 + $0x38] sm:$0xff] }
  0xd6   : > { %1189 = vmatprep.subr.bf16.mxu1 %v799_v3 }
 0x18f   : > { %v1850_v5 = vpop.f32.mrb[0].mxu0 }
 0x190   : > { %v1852_v6 = vpop.f32.mrb[1].mxu0 }
 0x191   : > { %v1854_v7 = vpop.f32.mrb[2].mxu0  ;;  %v490_v8 = vmax.f32 %v1850_v5, %v1852_v6 }
 0x192   : > { %v1858_v9 = vpop.f32.mrb[3].mxu0 }
 0x193   : > { %491 = vmax.xlane.f32.xlu0 %v490_v8  ;;  %v493_v10 = vmax.f32 %v1854_v7, %v1858_v9  ;;  %v764_v8 = vld [vmem:[%s1908_s18 + $0x48] sm:$0xff] }
 0x197   : > { %494 = vmax.xlane.f32.xlu0 %v493_v10  ;;  %v1862_v11 = vpop.f32.mrb[4].mxu0 }
 0x198   : > { %v1864_v12 = vpop.f32.mrb[5].mxu0 }
 0x199   : > { %v1866_v13 = vpop.f32.mrb[6].mxu0  ;;  %v496_v14 = vmax.f32 %v1862_v11, %v1864_v12 }
 0x19a   : > { %v1870_v15 = vpop.f32.mrb[7].mxu0 }
 0x19b   : > { %497 = vmax.xlane.f32.xlu1 %v496_v14  ;;  %v499_v16 = vmax.f32 %v1866_v13, %v1870_v15  ;;  %v791_v14 = vpack.c.bf16 %v764_v8, %v763_v4 }
 0x19d   : > { %1190 = vmatpush3.bf16.msra.mxu1 %v791_v14 }
 0x19f   : > { %500 = vmax.xlane.f32.xlu1 %v499_v16  ;;  %v1874_v17 = vpop.f32.mrb[8].mxu0  ;;  %v1955_v16 = vld [vmem:[#allocation3 + $0x18] sm:$0xff] }
 0x1a0   : > { %v1876_v18 = vpop.f32.mrb[9].mxu0 }
 0x1a1   : > { %v1878_v19 = vpop.f32.mrb[10].mxu0  ;;  %v502_v20 = vmax.f32 %v1874_v17, %v1876_v18 }
 0x1a2   : > { %v1882_v21 = vpop.f32.mrb[11].mxu0 }
 0x1a3   : > { %503 = vmax.xlane.f32.xlu0 %v502_v20  ;;  %v505_v23 = vmax.f32 %v1878_v19, %v1882_v21 }
 0x1a5   : > { %506 = vmax.xlane.f32.xlu1 %v505_v23  ;;  %v782_v23 = vld [vmem:[%s1908_s18 + $0xd8] sm:$0xff] }
 0x1a7   : > { %v1886_v24 = vpop.f32.mrb[12].mxu0 }
 0x1a8   : > { %v1888_v25 = vpop.f32.mrb[13].mxu0 }
 0x1a9   : > { %v1890_v26 = vpop.f32.mrb[14].mxu0  ;;  %v508_v27 = vmax.f32 %v1886_v24, %v1888_v25 }
 0x1aa   : > { %v1894_v28 = vpop.f32.mrb[15].mxu0 }
 0x1ab   : > { %v511_v29 = vmax.f32 %v1890_v26, %v1894_v28  ;;  %509 = vmax.xlane.f32.xlu0 %v508_v27 }
 0x1ad   : > { %512 = vmax.xlane.f32.xlu1 %v511_v29  ;;  %v800_v29 = vpack.c.bf16 %v782_v23, %v781_v22 }
 0x1af   : > { %1191 = vmatprep.subr.bf16.mxu1 %v800_v29 }
 0x1b0   : > { %1192 = vmatpush3.bf16.msra.mxu1 %v792_v33 }
 0x1b1   : > { %1193 = vmatprep.subr.bf16.mxu1 %v801_v40 }
 0x1b4   : > { %1194 = vmatpush3.bf16.msra.mxu1 %v793_v44 }
 0x220   : > { %v492_v50 = vpop.xlane.xlu0 %491 }
 0x221   : > { %v1925_v51 = vmax.f32 %v1922_v49, %v492_v50  ;;  %v786_v50 = vld [vmem:[%s1908_s18 + $0xf8] sm:$0xff] }
 0x222   : > { %v802_v54 = vpack.c.bf16 %v786_v50, %v785_v48 }
 0x223   : > { %v522_v53 = vsub.f32 %v1922_v49, %v1925_v51  ;;  %884 = vst.msk [vmem:[#allocation3] sm:$0xff] %vm332_vm0, %v1925_v51  ;;  %548 = vperm.xlu0 %1300, %v1925_v51  }
 0x224   : > { %v495_v56 = vpop.xlane.xlu0 %494  ;;  %1195 = vmatprep.subr.bf16.mxu1 %v802_v54 }
 0x225   : > { %v1939_v60 = vmax.f32 %v1927_v52, %v495_v56  ;;  %v770_v56 = vld [vmem:[%s1908_s18 + $0x78] sm:$0xff] }
 0x226   : > { %v794_v58 = vpack.c.bf16 %v770_v56, %v769_v55 }
 0x227   : > { %v523_v63 = vsub.f32 %v1927_v52, %v1939_v60  ;;  %885 = vst.msk [vmem:[#allocation3 + $0x8] sm:$0xff] %vm332_vm0, %v1939_v60  ;;  %553 = vperm.xlu1 %1301, %v1939_v60  }
 0x228   : > { %v498_v2 = vpop.xlane.xlu1 %497  ;;  %1196 = vmatpush3.bf16.msra.mxu1 %v794_v58 }
 0x229   : > { %v1953_v10 = vmax.f32 %v1941_v62, %v498_v2 }
 0x22b   : > { %v524_v20 = vsub.f32 %v1941_v62, %v1953_v10  ;;  %886 = vst.msk [vmem:[#allocation3 + $0x10] sm:$0xff] %vm332_vm0, %v1953_v10  ;;  %558 = vperm.xlu1 %1301, %v1953_v10  }
 0x22c   : > { %v501_v27 = vpop.xlane.xlu1 %500 }
 0x22d   : > { %v1967_v32 = vmax.f32 %v1955_v16, %v501_v27 }
 0x22f   : > { %v525_v35 = vsub.f32 %v1955_v16, %v1967_v32  ;;  %887 = vst.msk [vmem:[#allocation3 + $0x18] sm:$0xff] %vm332_vm0, %v1967_v32  ;;  %563 = vperm.xlu1 %1301, %v1967_v32  }
 0x230   : > { %v504_v38 = vpop.xlane.xlu0 %503 }
 0x231   : > { %v1983_v43 = vmax.f32 %v1969_v34, %v504_v38 }
 0x232   : > { %v507_v45 = vpop.xlane.xlu1 %506 }
 0x233   : > { %v526_v46 = vsub.f32 %v1969_v34, %v1983_v43  ;;  %888 = vst.msk [vmem:[#allocation3 + $0x20] sm:$0xff] %vm332_vm0, %v1983_v43  ;;  %v1990_v47 = vmax.f32 %v1978_v39, %v507_v45  ;;  %568 = vperm.xlu1 %1301, %v1983_v43  }
 0x235   : > { %v527_v57 = vsub.f32 %v1978_v39, %v1990_v47  ;;  %889 = vst.msk [vmem:[#allocation3 + $0x28] sm:$0xff] %vm332_vm0, %v1990_v47  ;;  %v538_v52 = vmul.f32 1.442695, %v526_v46 }
 0x237   : > { %573 = vperm.xlu1 %1301, %v1990_v47   ;;  %v540_v49 = vmul.f32 1.442695, %v527_v57  ;;  %v635_v47 = vld [vmem:[#allocation4 + $0x8] sm:$0xff] }
 0x238   : > { %v510_v61 = vpop.xlane.xlu0 %509 }
 0x239   : > { %v2007_v1 = vmax.f32 %v2001_v59, %v510_v61 }
 0x23a   : > { %v513_v2 = vpop.xlane.xlu1 %512 }
 0x23b   : > { %v528_v3 = vsub.f32 %v2001_v59, %v2007_v1  ;;  %890 = vst.msk [vmem:[#allocation3 + $0x30] sm:$0xff] %vm332_vm0, %v2007_v1  ;;  %v2014_v4 = vmax.f32 %v2004_v0, %v513_v2  ;;  %578 = vperm.xlu1 %1301, %v2007_v1  }
 0x23d   : > { %v529_v8 = vsub.f32 %v2004_v0, %v2014_v4  ;;  %891 = vst.msk [vmem:[#allocation3 + $0x38] sm:$0xff] %vm332_vm0, %v2014_v4  ;;  %v542_v51 = vmul.f32 1.442695, %v528_v3  ;;  %v636_v0 = vld [vmem:[#allocation4 + $0x10] sm:$0xff] }
 0x23f   : > { %583 = vperm.xlu1 %1301, %v2014_v4  }
 0x2a2   : > { %v549_v14 = vpop.permute.xlu0 %548 }
 0x2a3   : > { %v586_v22 = vsub.f32 %v1850_v5, %v549_v14  ;;  %v587_v23 = vsub.f32 %v1852_v6, %v549_v14 }
 0x2a5   : > { %v602_v27 = vmul.f32 1.442695, %v586_v22  ;;  %v604_v29 = vmul.f32 1.442695, %v587_v23 }
 0x2a6   : > { %v554_v30 = vpop.permute.xlu1 %553 }
 0x2a7   : > { %1302 = vpow2.f32 %v602_v27  ;;  %v588_v31 = vsub.f32 %v1854_v7, %v554_v30  ;;  %v589_v33 = vsub.f32 %v1858_v9, %v554_v30 }
 0x2a8   : > { %1304 = vpow2.f32 %v604_v29 }
 0x2a9   : > { %v606_v36 = vmul.f32 1.442695, %v588_v31  ;;  %v608_v37 = vmul.f32 1.442695, %v589_v33 }
 0x2aa   : > { %v559_v38 = vpop.permute.xlu1 %558 }
 0x2ab   : > { %1306 = vpow2.f32 %v606_v36  ;;  %v590_v40 = vsub.f32 %v1862_v11, %v559_v38  ;;  %v591_v41 = vsub.f32 %v1864_v12, %v559_v38 }
 0x2ac   : > { %1308 = vpow2.f32 %v608_v37 }
 0x2ad   : > { %v610_v5 = vmul.f32 1.442695, %v590_v40  ;;  %v612_v6 = vmul.f32 1.442695, %v591_v41 }
 0x2ae   : > { %v564_v42 = vpop.permute.xlu1 %563 }
 0x2af   : > { %1310 = vpow2.f32 %v610_v5  ;;  %v592_v44 = vsub.f32 %v1866_v13, %v564_v42  ;;  %v593_v7 = vsub.f32 %v1870_v15, %v564_v42 }
 0x2b0   : > { %1312 = vpow2.f32 %v612_v6 }
 0x2b1   : > { %v1303_v9 = vpop.eup %1302  ;;  %v614_v45 = vmul.f32 1.442695, %v592_v44  ;;  %v616_v48 = vmul.f32 1.442695, %v593_v7 }
 0x2b2   : > { %v1305_v50 = vpop.eup %1304  ;;  %v569_v54 = vpop.permute.xlu1 %568 }
 0x2b3   : > { %1314 = vpow2.f32 %v614_v45  ;;  %v594_v11 = vsub.f32 %v1874_v17, %v569_v54  ;;  %v595_v12 = vsub.f32 %v1876_v18, %v569_v54  ;;  %v650_v55 = vadd.f32 %v1305_v50, %v1303_v9 }
 0x2b4   : > { %1316 = vpow2.f32 %v616_v48 }
 0x2b5   : > { %v1307_v56 = vpop.eup %1306  ;;  %v618_v58 = vmul.f32 1.442695, %v594_v11  ;;  %v620_v61 = vmul.f32 1.442695, %v595_v12  ;;  %651 = vadd.xlane.f32.xlu1 %v650_v55 }
 0x2b6   : > { %v1309_v13 = vpop.eup %1308  ;;  %v574_v2 = vpop.permute.xlu1 %573  ;;  %v747_v15 = vpack.c.bf16 %v1307_v56, %v1303_v9 }
 0x2b7   : > { %1318 = vpow2.f32 %v618_v58  ;;  %v596_v14 = vsub.f32 %v1878_v19, %v574_v2  ;;  %v597_v22 = vsub.f32 %v1882_v21, %v574_v2  ;;  %v748_v23 = vpack.c.bf16 %v1309_v13, %v1305_v50 }
 0x2b8   : > { %1320 = vpow2.f32 %v620_v61  ;;  %v653_v27 = vadd.f32 %v1309_v13, %v1307_v56 }
 0x2b9   : > { %v1311_v17 = vpop.eup %1310  ;;  %v622_v29 = vmul.f32 1.442695, %v596_v14  ;;  %v624_v18 = vmul.f32 1.442695, %v597_v22  ;;  %835 = vmatprep.mubr.bf16.mxu1 %v748_v23  ;;  %v532_v14 = vmul.f32 1.442695, %v523_v63 }
 0x2ba   : > { %v1313_v30 = vpop.eup %1312  ;;  %654 = vadd.xlane.f32.xlu0 %v653_v27  ;;  %836 = vmatmul.mubr.bf16.vlgmr.msra.gmra.mrb[0].mxu1 %v747_v15  ;;  %v579_v31 = vpop.permute.xlu1 %578  ;;  %v530_v22 = vmul.f32 1.442695, %v522_v53  ;;  %v534_v23 = vmul.f32 1.442695, %v524_v20  ;;  %v536_v27 = vmul.f32 1.442695, %v525_v35 }
 0x2bb   : > { %1322 = vpow2.f32 %v622_v29  ;;  %v598_v33 = vsub.f32 %v1886_v24, %v579_v31  ;;  %v599_v36 = vsub.f32 %v1888_v25, %v579_v31  ;;  %v656_v37 = vadd.f32 %v1313_v30, %v1311_v17  ;;  %v634_v35 = vld [vmem:[#allocation4] sm:$0xff] }
 0x2bc   : > { %1324 = vpow2.f32 %v624_v18  ;;  %v544_v53 = vmul.f32 1.442695, %v529_v8  ;;  %v637_v8 = vld [vmem:[#allocation4 + $0x18] sm:$0xff] }
 0x2bd   : > { %v1315_v19 = vpop.eup %1314  ;;  %v626_v21 = vmul.f32 1.442695, %v598_v33  ;;  %v628_v38 = vmul.f32 1.442695, %v599_v36 }
 0x2be   : > { %v1317_v40 = vpop.eup %1316  ;;  %657 = vadd.xlane.f32.xlu0 %v656_v37  ;;  %v584_v41 = vpop.permute.xlu1 %583  ;;  %v749_v5 = vpack.c.bf16 %v1315_v19, %v1311_v17 }
 0x2bf   : > { %1326 = vpow2.f32 %v626_v21  ;;  %v600_v6 = vsub.f32 %v1890_v26, %v584_v41  ;;  %v601_v42 = vsub.f32 %v1894_v28, %v584_v41  ;;  %v750_v44 = vpack.c.bf16 %v1317_v40, %v1313_v30  ;;  %v638_v30 = vld [vmem:[#allocation4 + $0x20] sm:$0xff]  ;;  %v639_v21 = vld [vmem:[#allocation4 + $0x28] sm:$0xff] }
 0x2c0   : > { %1328 = vpow2.f32 %v628_v38  ;;  %v659_v7 = vadd.f32 %v1317_v40, %v1315_v19 }
 0x2c1   : > { %v1319_v24 = vpop.eup %1318  ;;  %v630_v9 = vmul.f32 1.442695, %v600_v6  ;;  %v632_v25 = vmul.f32 1.442695, %v601_v42  ;;  %843 = vmatprep.mubr.bf16.mxu1 %v750_v44  ;;  %v640_v6 = vld [vmem:[#allocation4 + $0x30] sm:$0xff] }
 0x2c2   : > { %v1321_v45 = vpop.eup %1320  ;;  %660 = vadd.xlane.f32.xlu1 %v659_v7  ;;  %844 = vmatmul.mubr.bf16.gmra.mrb[4].mxu1 %v749_v5 }
 0x2c3   : > { %1330 = vpow2.f32 %v630_v9  ;;  %v662_v48 = vadd.f32 %v1321_v45, %v1319_v24 }
 0x2c4   : > { %1332 = vpow2.f32 %v632_v25  ;;  %v641_v25 = vld [vmem:[#allocation4 + $0x38] sm:$0xff] }
 0x2c5   : > { %v1323_v50 = vpop.eup %1322  ;;  %663 = vadd.xlane.f32.xlu0 %v662_v48  ;;  %1334 = vpow2.f32 %v532_v14 }
 0x2c6   : > { %v1325_v54 = vpop.eup %1324  ;;  %v751_v11 = vpack.c.bf16 %v1323_v50, %v1319_v24  ;;  %1336 = vpow2.f32 %v530_v22 }
 0x2c7   : > { %v752_v26 = vpack.c.bf16 %v1325_v54, %v1321_v45  ;;  %v665_v12 = vadd.f32 %v1325_v54, %v1323_v50  ;;  %1338 = vpow2.f32 %v534_v23 }
 0x2c8   : > { %1340 = vpow2.f32 %v536_v27 }
 0x2c9   : > { %v1327_v28 = vpop.eup %1326  ;;  %851 = vmatprep.mubr.bf16.mxu1 %v752_v26  ;;  %666 = vadd.xlane.f32.xlu1 %v665_v12  ;;  %1342 = vpow2.f32 %v538_v52 }
 0x2ca   : > { %v1329_v55 = vpop.eup %1328  ;;  %852 = vmatmul.mubr.bf16.gmra.mrb[8].mxu1 %v751_v11  ;;  %1344 = vpow2.f32 %v540_v49 }
 0x2cb   : > { %v668_v56 = vadd.f32 %v1329_v55, %v1327_v28  ;;  %1346 = vpow2.f32 %v542_v51 }
 0x2cc   : > { %1348 = vpow2.f32 %v544_v53 }
 0x2cd   : > { %v1331_v58 = vpop.eup %1330  ;;  %669 = vadd.xlane.f32.xlu0 %v668_v56 }
 0x2ce   : > { %v1333_v61 = vpop.eup %1332  ;;  %v753_v13 = vpack.c.bf16 %v1331_v58, %v1327_v28 }
 0x2cf   : > { %v754_v2 = vpack.c.bf16 %v1333_v61, %v1329_v55  ;;  %v671_v15 = vadd.f32 %v1333_v61, %v1331_v58  ;;  %v1335_v60 = vpop.eup %1334 }
 0x2d0   : > { %v1337_v62 = vpop.eup %1336  ;;  %v643_v57 = vmul.f32 %v1335_v60, %v635_v47 }
 0x2d1   : > { %859 = vmatprep.mubr.bf16.mxu1 %v754_v2  ;;  %672 = vadd.xlane.f32.xlu1 %v671_v15  ;;  %v1339_v63 = vpop.eup %1338  ;;  %v642_v39 = vmul.f32 %v1337_v62, %v634_v35 }
 0x2d2   : > { %860 = vmatmul.mubr.bf16.gmra.mrb[12].mxu1 %v753_v13  ;;  %v1341_v10 = vpop.eup %1340  ;;  %v644_v3 = vmul.f32 %v1339_v63, %v636_v0 }
 0x2d3   : > { %v1343_v16 = vpop.eup %1342  ;;  %v645_v18 = vmul.f32 %v1341_v10, %v637_v8 }
 0x2d4   : > { %v1345_v20 = vpop.eup %1344  ;;  %v646_v36 = vmul.f32 %v1343_v16, %v638_v30 }
 0x2d5   : > { %v1347_v32 = vpop.eup %1346  ;;  %v647_v40 = vmul.f32 %v1345_v20, %v639_v21 }
 0x2d6   : > { %v1349_v34 = vpop.eup %1348  ;;  %v648_v7 = vmul.f32 %v1347_v32, %v640_v6 }
 0x2d7   : > { %v649_v54 = vmul.f32 %v1349_v34, %v641_v25 }
 0x2e2   : > { %706 = vperm.xlu1 %1301, %v1335_v60  }
 0x2e3   : > { %701 = vperm.xlu0 %1300, %v1337_v62  }
 0x2e6   : > { %711 = vperm.xlu1 %1301, %v1339_v63  }
 0x2e7   : > { %716 = vperm.xlu0 %1300, %v1341_v10  }
 0x2ea   : > { %721 = vperm.xlu1 %1301, %v1343_v16  }
 0x2eb   : > { %726 = vperm.xlu0 %1300, %v1345_v20  }
 0x2ee   : > { %731 = vperm.xlu1 %1301, %v1347_v32  }
 0x2ef   : > { %736 = vperm.xlu0 %1300, %v1349_v34  }
 0x342   : > { %v652_v43 = vpop.xlane.xlu1 %651 }
 0x343   : > { %v674_v46 = vadd.f32 %v652_v43, %v642_v39 }
 0x345   : > { %683 = vst.msk [vmem:[#allocation4] sm:$0xff] %vm332_vm0, %v674_v46 }
 0x347   : > { %v655_v59 = vpop.xlane.xlu0 %654 }
 0x348   : > { %v675_v1 = vadd.f32 %v655_v59, %v643_v57 }
 0x34a   : > { %684 = vst.msk [vmem:[#allocation4 + $0x8] sm:$0xff] %vm332_vm0, %v675_v1 }
 0x34b   : > { %v658_v4 = vpop.xlane.xlu0 %657 }
 0x34c   : > { %v676_v17 = vadd.f32 %v658_v4, %v644_v3  ;;  %v895_v29 = vld [vmem:[#allocation4] sm:$0xff] }
 0x34d   : > { %1350 = vrcp.f32 %v895_v29 }
 0x34e   : > { %685 = vst.msk [vmem:[#allocation4 + $0x10] sm:$0xff] %vm332_vm0, %v676_v17 }
 0x34f   : > { %v661_v31 = vpop.xlane.xlu1 %660 }
 0x350   : > { %v677_v33 = vadd.f32 %v661_v31, %v645_v18 }
 0x351   : > { %v896_v37 = vld [vmem:[#allocation4 + $0x8] sm:$0xff] }
 0x352   : > { %686 = vst.msk [vmem:[#allocation4 + $0x18] sm:$0xff] %vm332_vm0, %v677_v33  ;;  %v664_v19 = vpop.xlane.xlu0 %663  ;;  %1352 = vrcp.f32 %v896_v37 }
 0x353   : > { %v678_v38 = vadd.f32 %v664_v19, %v646_v36 }
 0x355   : > { %687 = vst.msk [vmem:[#allocation4 + $0x20] sm:$0xff] %vm332_vm0, %v678_v38  ;;  %v897_v41 = vld [vmem:[#allocation4 + $0x10] sm:$0xff] }
 0x356   : > { %v667_v5 = vpop.xlane.xlu1 %666  ;;  %1354 = vrcp.f32 %v897_v41 }
 0x357   : > { %v1351_v42 = vpop.eup %1350  ;;  %v679_v44 = vadd.f32 %v667_v5, %v647_v40 }
 0x358   : > { %921 = vperm.xlu1 %1301, %v1351_v42  }
 0x359   : > { %688 = vst.msk [vmem:[#allocation4 + $0x28] sm:$0xff] %vm332_vm0, %v679_v44  ;;  %v898_v24 = vld [vmem:[#allocation4 + $0x18] sm:$0xff] }
 0x35a   : > { %v670_v9 = vpop.xlane.xlu0 %669  ;;  %1356 = vrcp.f32 %v898_v24 }
 0x35b   : > { %v680_v45 = vadd.f32 %v670_v9, %v648_v7 }
 0x35c   : > { %v1353_v48 = vpop.eup %1352  ;;  %v899_v50 = vld [vmem:[#allocation4 + $0x20] sm:$0xff] }
 0x35d   : > { %689 = vst.msk [vmem:[#allocation4 + $0x30] sm:$0xff] %vm332_vm0, %v680_v45  ;;  %926 = vperm.xlu0 %1300, %v1353_v48   ;;  %1358 = vrcp.f32 %v899_v50 }
 0x35e   : > { %v673_v11 = vpop.xlane.xlu1 %672 }
 0x35f   : > { %v681_v26 = vadd.f32 %v673_v11, %v649_v54 }
 0x360   : > { %v1355_v12 = vpop.eup %1354  ;;  %v900_v28 = vld [vmem:[#allocation4 + $0x28] sm:$0xff] }
 0x361   : > { %690 = vst.msk [vmem:[#allocation4 + $0x38] sm:$0xff] %vm332_vm0, %v681_v26  ;;  %931 = vperm.xlu1 %1301, %v1355_v12   ;;  %1360 = vrcp.f32 %v900_v28 }
 0x362   : > { %v707_v1 = vpop.permute.xlu1 %706  ;;  %v702_v3 = vpop.permute.xlu0 %701 }
 0x363   : > { %v739_v30 = vmul.f32 0.0, %v702_v3  ;;  %v740_v19 = vmul.f32 0.0, %v707_v1 }
 0x364   : > { %v1357_v55 = vpop.eup %1356  ;;  %v901_v56 = vld [vmem:[#allocation4 + $0x30] sm:$0xff] }
 0x365   : > { %936 = vperm.xlu0 %1300, %v1357_v55   ;;  %1362 = vrcp.f32 %v901_v56 }
 0x366   : > { %v712_v4 = vpop.permute.xlu1 %711  ;;  %v717_v8 = vpop.permute.xlu0 %716 }
 0x367   : > { %v1359_v58 = vpop.eup %1358  ;;  %v741_v40 = vmul.f32 0.0, %v712_v4  ;;  %v742_v42 = vmul.f32 0.0, %v717_v8 }
 0x368   : > { %941 = vperm.xlu1 %1301, %v1359_v58   ;;  %v902_v61 = vld [vmem:[#allocation4 + $0x38] sm:$0xff] }
 0x369   : > { %1364 = vrcp.f32 %v902_v61 }
 0x36a   : > { %v722_v17 = vpop.permute.xlu1 %721  ;;  %v727_v29 = vpop.permute.xlu0 %726 }
 0x36b   : > { %v1361_v13 = vpop.eup %1360  ;;  %v743_v24 = vmul.f32 0.0, %v722_v17  ;;  %v744_v50 = vmul.f32 0.0, %v727_v29 }
 0x36c   : > { %946 = vperm.xlu0 %1300, %v1361_v13  }
 0x36e   : > { %v732_v18 = vpop.permute.xlu1 %731  ;;  %v737_v36 = vpop.permute.xlu0 %736 }
 0x36f   : > { %v1363_v2 = vpop.eup %1362  ;;  %v745_v12 = vmul.f32 0.0, %v732_v18  ;;  %v746_v58 = vmul.f32 0.0, %v737_v36 }
 0x370   : > { %951 = vperm.xlu1 %1301, %v1363_v2  }
 0x373   : > { %v1365_v15 = vpop.eup %1364 }
 0x374   : > { %956 = vperm.xlu0 %1300, %v1365_v15  }
 0x38d   : > { %v1197_v14 = vpop.f32.mrb[0].mxu1 }
 0x38e   : > { %v1198_v22 = vpop.f32.mrb[1].mxu1 }
 0x38f   : > { %v1199_v23 = vadd.f32 %v1198_v22, %v1197_v14  ;;  %v1200_v27 = vpop.f32.mrb[2].mxu1 }
 0x390   : > { %v1201_v52 = vpop.f32.mrb[3].mxu1 }
 0x391   : > { %v1202_v49 = vadd.f32 %v1201_v52, %v1200_v27  ;;  %v868_v31 = vadd.f32 %v1199_v23, %v739_v30 }
 0x393   : > { %v869_v21 = vadd.f32 %v1202_v49, %v740_v19 }
 0x395   : > { %v1203_v51 = vpop.f32.mrb[4].mxu1 }
 0x396   : > { %v1204_v53 = vpop.f32.mrb[5].mxu1 }
 0x397   : > { %v1205_v60 = vadd.f32 %v1204_v53, %v1203_v51  ;;  %v1206_v62 = vpop.f32.mrb[6].mxu1 }
 0x398   : > { %v1207_v63 = vpop.f32.mrb[7].mxu1 }
 0x399   : > { %v1208_v10 = vadd.f32 %v1207_v63, %v1206_v62  ;;  %v870_v5 = vadd.f32 %v1205_v60, %v741_v40 }
 0x39b   : > { %v871_v7 = vadd.f32 %v1208_v10, %v742_v42 }
 0x39d   : > { %v1209_v16 = vpop.f32.mrb[8].mxu1 }
 0x39e   : > { %v1210_v20 = vpop.f32.mrb[9].mxu1 }
 0x39f   : > { %v1211_v32 = vadd.f32 %v1210_v20, %v1209_v16  ;;  %v1212_v34 = vpop.f32.mrb[10].mxu1 }
 0x3a0   : > { %v1213_v35 = vpop.f32.mrb[11].mxu1 }
 0x3a1   : > { %v1214_v39 = vadd.f32 %v1213_v35, %v1212_v34  ;;  %v872_v45 = vadd.f32 %v1211_v32, %v743_v24 }
 0x3a3   : > { %v873_v11 = vadd.f32 %v1214_v39, %v744_v50 }
 0x3a5   : > { %v1215_v43 = vpop.f32.mrb[12].mxu1 }
 0x3a6   : > { %v1216_v46 = vpop.f32.mrb[13].mxu1 }
 0x3a7   : > { %v1217_v47 = vadd.f32 %v1216_v46, %v1215_v43  ;;  %v1218_v57 = vpop.f32.mrb[14].mxu1 }
 0x3a8   : > { %v1219_v59 = vpop.f32.mrb[15].mxu1 }
 0x3a9   : > { %v1220_v0 = vadd.f32 %v1219_v59, %v1218_v57  ;;  %v874_v55 = vadd.f32 %v1217_v47, %v745_v12 }
 0x3ab   : > { %v875_v13 = vadd.f32 %v1220_v0, %v746_v58 }
 0x3d7   : > { %v922_v33 = vpop.permute.xlu1 %921 }
 0x3d8   : > { %v959_v37 = vmul.f32 %v922_v33, %v868_v31 }
 0x3da   : > { %967 = vst [vmem:[%s2072_s24] sm:$0xff] %v959_v37 }
 0x3dc   : > { %v927_v38 = vpop.permute.xlu0 %926 }
 0x3dd   : > { %v960_v41 = vmul.f32 %v927_v38, %v869_v21 }
 0x3df   : > { %968 = vst [vmem:[%s2072_s24 + $0x8] sm:$0xff] %v960_v41 }
 0x3e0   : > { %v932_v6 = vpop.permute.xlu1 %931 }
 0x3e1   : > { %v961_v44 = vmul.f32 %v932_v6, %v870_v5 }
 0x3e3   : > { %969 = vst [vmem:[%s2072_s24 + $0x10] sm:$0xff] %v961_v44 }
 0x3e4   : > { %v937_v9 = vpop.permute.xlu0 %936 }
 0x3e5   : > { %v962_v25 = vmul.f32 %v937_v9, %v871_v7 }
 0x3e7   : > { %970 = vst [vmem:[%s2072_s24 + $0x18] sm:$0xff] %v962_v25  ;;  %v942_v48 = vpop.permute.xlu1 %941 }
 0x3e8   : > { %v963_v54 = vmul.f32 %v942_v48, %v872_v45 }
 0x3ea   : > { %971 = vst [vmem:[%s2072_s24 + $0x20] sm:$0xff] %v963_v54 }
 0x3eb   : > { %v947_v26 = vpop.permute.xlu0 %946 }
 0x3ec   : > { %v964_v28 = vmul.f32 %v947_v26, %v873_v11 }
 0x3ee   : > { %972 = vst [vmem:[%s2072_s24 + $0x28] sm:$0xff] %v964_v28 }
 0x3ef   : > { %v952_v56 = vpop.permute.xlu1 %951 }
 0x3f0   : > { %v965_v61 = vmul.f32 %v952_v56, %v874_v55 }
 0x3f2   : > { %973 = vst [vmem:[%s2072_s24 + $0x30] sm:$0xff] %v965_v61 }
 0x3f3   : > { %v957_v2 = vpop.permute.xlu0 %956 }
 0x3f4   : > { %v966_v15 = vmul.f32 %v957_v2, %v875_v13 }
 0x3f6   : > { %974 = vst [vmem:[%s2072_s24 + $0x38] sm:$0xff] %v966_v15 }
 0x3f7   : > { %1469 = shalt.err (!%p1466_p13)
}
 0x3f8   : > { %s1470_s5 = scalar_lea.hbm %s2088_s20, 1024  ;;  %s1474_s14 = scalar_lea.hbm %s2141_s3, 2048 }
 0x3f9   : > { %p1471_p7 = scmp.ne.s32.totalorder %s2088_s20, %s1470_s5  ;;  %p1475_p5 = scmp.lt.u32.totalorder %s2088_s20, %s2141_s3 }
 0x3fa   : > { %p1476_p2 = scmp.lt.u32.totalorder %s1474_s14, %s1470_s5  ;;  %p1478_p0 = scmp.lt.u32.totalorder %s1470_s5, %s2088_s20 }
 0x3fb   : > { %p1472_p11 = pnand %p1471_p7, %p2163_p6 }
 0x3fc   : > { %p1477_p1 = por %p1476_p2, %p1475_p5 }
 0x3fd   : > { %p1473_p3 = pneg %p1472_p11 }
 0x3fe   : > { %p1479_p8 = por %p1478_p0, %p1477_p1 }
 0x400   : > { %p1480_p9 = pnand %p1479_p8, %p1473_p3 }
 0x402   : > { %1483 = shalt.err (!%p1480_p9)
}
 0x403   : > { %s1553_s11 = smov 128   ;;  %s1554_s6 = smov 8  }
 0x404   : > { %1227 = dma.vmem_to_hbm [thread:$0]  (%p2163_p6), %s2082_s8, 1024, %s2088_s20, %s976_s4, %s1553_s11, %s1553_s11, %s1554_s6  }
 0x405 PF: > { %s1006_s22 = sand.u32 1, %s1522_s12   ;;  %p2164_p12 = scmp.ne.s32.totalorder %s2155_s27, 0 }
 0x406   : > { %p2165_p4 = scmp.ge.s32.totalorder %s1542_s17, 2  ;;  %s1007_s18 = scalar_lea.sflag [#allocation8], %s1006_s22 }
 0x408   : > { %p1240_p10 = pnand %p2165_p4, %p2164_p12 }
 0x40a   : > { %1517 = dma.done.wait (!%p1240_p10), %s1007_s18, 1024  }
 0x40b   : > { %1519 = vsyncadd (!%p1240_p10), %s1007_s18, 4294966272  ;;  %s22_s17 = sadd.s32 1, %s1542_s17   ;;  %s2166_s24 = sld [smem:[#allocation16_spill]] }
 0x40c   : > { %p19_p13 = scmp.ge.s32.totalorder %s22_s17, 4   ;;  %s2167_s14 = sld [smem:[#allocation18_spill]] }
 0x40d   : > { %s2168_s25 = sld [smem:[#allocation17_spill]]  ;;  %s2169_s12 = smov %s1526_s13 }
 0x40e   : > { %s2171_s15 = smov %s1538_s16  ;;  %21 = sbr.rel (!%p19_p13) target bundleno = 10 (0xa), region = 109 }
 0x411   : > { %s2170_s13 = smov %s2166_s24 }
 0x413   : > { %s2172_s16 = smov %s2168_s25 }
 0x415   :  { %1012 = vsyncpa [#allocation7], 1 }
 0x416   :  { %1014 = vsyncpa [#allocation7 + $0x1], 1 }
 0x417   :  { %1015 = vsyncpa [#allocation10], 1 }
 0x418   :  { %1017 = vsyncpa [#allocation10 + $0x1], 1 }
 0x419   :  { %1018 = vsyncpa [#allocation8], 1 }
 0x41a   :  { %1020 = vsyncpa [#allocation8 + $0x1], 1 }

</bundles_post_ra>
